<compile_context>
chip_gen: v6e
topology: v6e:2x2x1
jax: 0.10.0
libtpu: 0.0.40
codegen_flags: <defaults>
</compile_context>

<pallas_src>
import functools

import jax
import jax.numpy as jnp
from jax import lax
from jax.experimental import pallas as pl
from jax.experimental.pallas import tpu as pltpu

BN_EPS = 0.0001
_VMEM_LIMIT = 48 * 1024 * 1024   # fits v7x's 64 MiB/TC with headroom


def _round_up(x, m):
    return (x + m - 1) // m * m


def _conv_stats_kernel(p_ref, w_ref, stats_ref):
    """Pass 1: MXU matmul (result discarded) -> per-block BN partial statistics.

    p_ref     : (TM, Kp)  bf16 im2col patches
    w_ref     : (Kp, Cp)  bf16 reshaped/padded conv weight (resident)
    stats_ref : (2, Cp)   f32 partials; row 0 = sum, row 1 = sum(x^2)
    """
    acc = jnp.dot(p_ref[...], w_ref[...], preferred_element_type=jnp.float32)
    s = jnp.sum(acc, axis=0, keepdims=True)            # (1, Cp)
    sq = jnp.sum(acc * acc, axis=0, keepdims=True)     # (1, Cp)
    stats_ref[...] = jnp.concatenate([s, sq], axis=0)  # (2, Cp)


def _conv_bn_relu_kernel(p_ref, w_ref, scale_ref, shift_ref, o_ref):
    """Pass 2: recompute the matmul, fused BN affine + ReLU, lane-dense output."""
    acc = jnp.dot(p_ref[...], w_ref[...], preferred_element_type=jnp.float32)
    o_ref[...] = jnp.maximum(
        acc * scale_ref[...] + shift_ref[...], 0.0).astype(o_ref.dtype)


@functools.partial(jax.jit, static_argnames=("block_m",))
def conv_bn_relu_2d(x_nchw, weight_oihw, gamma, beta, *, block_m=512):
    """Forward pass matching ConvBnRelu2d (training-mode BatchNorm)."""
    N, Cin, H, W = x_nchw.shape
    Cout, _, KH, KW = weight_oihw.shape
    M = N * H * W
    K = KH * KW * Cin

    mxu_dtype = jnp.bfloat16
    Cp = _round_up(Cout, 128)                  # lane-dense output channels
    Kp = _round_up(K, 16)                      # only sublane-friendly padding
    # Tile size: big tiles amortize per-grid-step overhead, but keep nblk >= 2
    # so the "parallel" axis shards across both TensorCores on v7x.
    TM = min(block_m, max(8, _round_up(-(-M // 2), 8)))
    Mp = _round_up(max(M, TM), TM)
    nblk = Mp // TM

    # ---- glue: im2col (zero rows / zero K-cols contribute 0 to conv & stats) ----
    x_nhwc = jnp.transpose(x_nchw, (0, 2, 3, 1)).astype(mxu_dtype)
    xp = jnp.pad(x_nhwc, ((0, 0), (1, 1), (1, 1), (0, 0)))
    taps = [xp[:, kh:kh + H, kw:kw + W, :]
            for kh in range(KH) for kw in range(KW)]
    patches = jnp.stack(taps, axis=3).reshape(M, K)           # (M, 9*Cin)
    patches = jnp.pad(patches, ((0, Mp - M), (0, Kp - K)))

    w_mat = jnp.transpose(weight_oihw, (2, 3, 1, 0)).reshape(K, Cout)
    w_mat = jnp.pad(w_mat, ((0, Kp - K), (0, Cp - Cout))).astype(mxu_dtype)

    cparams = pltpu.CompilerParams(
        dimension_semantics=("parallel",), vmem_limit_bytes=_VMEM_LIMIT)

    # ---- pass 1: stats only (no activation intermediate is ever stored) ----
    partial_stats = pl.pallas_call(
        _conv_stats_kernel,
        out_shape=jax.ShapeDtypeStruct((nblk, 2, Cp), jnp.float32),
        grid_spec=pl.GridSpec(
            grid=(nblk,),
            in_specs=[
                pl.BlockSpec((TM, Kp), lambda i: (i, 0)),
                pl.BlockSpec((Kp, Cp), lambda i: (0, 0)),
            ],
            out_specs=pl.BlockSpec((None, 2, Cp), lambda i: (i, 0, 0)),
        ),
        compiler_params=cparams,
    )(patches, w_mat)

    # ---- per-channel glue (Cp elements, all f32): batch stats -> scale/shift ----
    # NOTE: sum/sum(x^2) variance can lose precision for very large M; switch to
    # a per-block (mean, M2) Chan/Welford combine here if M reaches millions.
    stats = jnp.sum(partial_stats, axis=0)                     # (2, Cp)
    count = jnp.float32(M)                                     # true element count
    mean = stats[0] / count                                    # (Cp,)
    var = jnp.maximum(stats[1] / count - mean * mean, 0.0)     # biased batch var
    gamma_p = jnp.pad(gamma.astype(jnp.float32), (0, Cp - Cout))
    beta_p = jnp.pad(beta.astype(jnp.float32), (0, Cp - Cout))
    scale_c = gamma_p * lax.rsqrt(var + BN_EPS)
    shift_c = beta_p - mean * scale_c
    scale = scale_c.reshape(1, Cp)
    shift = shift_c.reshape(1, Cp)

    # ---- pass 2: recompute matmul fused with BN affine + ReLU, lane-dense out ----
    out_flat = pl.pallas_call(
        _conv_bn_relu_kernel,
        out_shape=jax.ShapeDtypeStruct((Mp, Cp), x_nchw.dtype),
        grid_spec=pl.GridSpec(
            grid=(nblk,),
            in_specs=[
                pl.BlockSpec((TM, Kp), lambda i: (i, 0)),
                pl.BlockSpec((Kp, Cp), lambda i: (0, 0)),
                pl.BlockSpec((1, Cp), lambda i: (0, 0)),
                pl.BlockSpec((1, Cp), lambda i: (0, 0)),
            ],
            out_specs=pl.BlockSpec((TM, Cp), lambda i: (i, 0)),
        ),
        compiler_params=cparams,
    )(patches, w_mat, scale, shift)

    out = out_flat[:M, :Cout].reshape(N, H, W, Cout)
    return jnp.transpose(out, (0, 3, 1, 2))                    # back to NCHW


def _reference(x_nchw, weight_oihw, gamma, beta, conv_dtype=jnp.float32):
    """Plain-JAX reference mirroring the PyTorch module (training-mode BN)."""
    y = lax.conv_general_dilated(
        x_nchw.astype(conv_dtype), weight_oihw.astype(conv_dtype),
        window_strides=(1, 1), padding=((1, 1), (1, 1)),
        dimension_numbers=("NCHW", "OIHW", "NCHW"),
        preferred_element_type=jnp.float32)
    mean = y.mean(axis=(0, 2, 3), keepdims=True)
    var = ((y - mean) ** 2).mean(axis=(0, 2, 3), keepdims=True)
    yn = (y - mean) / jnp.sqrt(var + BN_EPS)
    yn = yn * gamma.reshape(1, -1, 1, 1) + beta.reshape(1, -1, 1, 1)
    return jnp.maximum(yn, 0.0)


if __name__ == "__main__":
    key = jax.random.PRNGKey(0)
    k_x, k_w, k_g, k_b = jax.random.split(key, 4)

    N, Cin, Cout, H, W = 2, 4, 8, 16, 16

    x = jax.random.normal(k_x, (N, Cin, H, W), dtype=jnp.float32)
    weight = jax.random.normal(k_w, (Cout, Cin, 3, 3), dtype=jnp.float32) * 0.1
    gamma = 1.0 + 0.1 * jax.random.normal(k_g, (Cout,), dtype=jnp.float32)
    beta = 0.1 * jax.random.normal(k_b, (Cout,), dtype=jnp.float32)

    out = jax.block_until_ready(conv_bn_relu_2d(x, weight, gamma, beta))
    assert out.shape == (N, Cout, H, W), out.shape

    # Strict check against a reference using the same bf16-rounded conv inputs
    # (kernel accumulates in f32; only the MXU input cast differs from f32).
    ref_bf16 = _reference(x, weight, gamma, beta, conv_dtype=jnp.bfloat16)
    assert jnp.allclose(out, ref_bf16, atol=5e-4, rtol=5e-4), (
        float(jnp.max(jnp.abs(out - ref_bf16))))

    # Loose sanity check against the pure-f32 reference (bf16 MXU input error).
    ref_f32 = _reference(x, weight, gamma, beta)
    assert jnp.allclose(out, ref_f32, atol=0.1, rtol=0.1), (
        float(jnp.max(jnp.abs(out - ref_f32))))

    print("KERNEL_OK")
</pallas_src>

<mosaic_0001>
module attributes {stable_mosaic.version = 11 : i64} {
  func.func @_conv_stats_kernel(%arg0: i32, %arg1: memref<256x48xbf16, #tpu.memory_space<vmem>>, %arg2: memref<48x128xbf16, #tpu.memory_space<vmem>>, %arg3: memref<1x2x128xf32, #tpu.memory_space<vmem>>) attributes {dimension_semantics = [#tpu.dimension_semantics<parallel>], iteration_bounds = array<i64: 2>, scalar_prefetch = 0 : i64, scratch_operands = 0 : i64, tpu.core_type = #tpu.core_type<tc>, window_params = [{transform_indices = @transform_0, window_bounds = array<i64: 256, 48>}, {pipeline_mode = #tpu.pipeline_mode<synchronous>, transform_indices = @transform_1, window_bounds = array<i64: 48, 128>}, {transform_indices = @transform_2, window_bounds = array<i64: 1, 2, 128>}]} {
    %c0 = arith.constant 0 : index
    %c0_0 = arith.constant 0 : index
    %0 = vector.load %arg1[%c0, %c0_0] : memref<256x48xbf16, #tpu.memory_space<vmem>>, vector<256x48xbf16>
    %c0_1 = arith.constant 0 : index
    %c0_2 = arith.constant 0 : index
    %1 = vector.load %arg2[%c0_1, %c0_2] : memref<48x128xbf16, #tpu.memory_space<vmem>>, vector<48x128xbf16>
    %cst = arith.constant dense<0.000000e+00> : vector<256x128xf32>
    %2 = tpu.matmul %0, %1, %cst {dimension_numbers = #tpu.dot_dimension_numbers<[1], [0], [0], [1], [0, 0, 1, 1], [], []>} : vector<256x48xbf16>, vector<48x128xbf16>, vector<256x128xf32> -> vector<256x128xf32>
    %cst_3 = arith.constant dense<0.000000e+00> : vector<128xf32>
    %3 = vector.multi_reduction <add>, %2, %cst_3 [0] : vector<256x128xf32> to vector<128xf32>
    %4 = vector.shape_cast %3 : vector<128xf32> to vector<1x128xf32>
    %5 = arith.mulf %2, %2 : vector<256x128xf32>
    %cst_4 = arith.constant dense<0.000000e+00> : vector<128xf32>
    %6 = vector.multi_reduction <add>, %5, %cst_4 [0] : vector<256x128xf32> to vector<128xf32>
    %7 = vector.shape_cast %6 : vector<128xf32> to vector<1x128xf32>
    %8 = tpu.concatenate %4, %7 in 0 : vector<1x128xf32>, vector<1x128xf32> -> vector<2x128xf32>
    %c0_5 = arith.constant 0 : index
    %c0_6 = arith.constant 0 : index
    %c0_7 = arith.constant 0 : index
    %9 = vector.load %arg3[%c0_5, %c0_6, %c0_7] : memref<1x2x128xf32, #tpu.memory_space<vmem>>, vector<1x2x128xf32>
    %10 = vector.shape_cast %9 : vector<1x2x128xf32> to vector<2x128xf32>
    %11 = vector.shape_cast %8 : vector<2x128xf32> to vector<1x2x128xf32>
    tpu.vector_store %arg3[%c0_5, %c0_6, %c0_7], %11 {strides = array<i32>} : memref<1x2x128xf32, #tpu.memory_space<vmem>>, vector<1x2x128xf32>,
    return
  }
  func.func @transform_0(%arg0: i32) -> (i32, i32) {
    %c0_i32 = arith.constant 0 : i32
    %c0_i32_0 = arith.constant 0 : i32
    return %arg0, %c0_i32 : i32, i32
  }
  func.func @transform_1(%arg0: i32) -> (i32, i32) {
    %c0_i32 = arith.constant 0 : i32
    %c0_i32_0 = arith.constant 0 : i32
    %c0_i32_1 = arith.constant 0 : i32
    return %c0_i32, %c0_i32_0 : i32, i32
  }
  func.func @transform_2(%arg0: i32) -> (i32, i32, i32) {
    %c0_i32 = arith.constant 0 : i32
    %c0_i32_0 = arith.constant 0 : i32
    %c0_i32_1 = arith.constant 0 : i32
    return %arg0, %c0_i32, %c0_i32_0 : i32, i32, i32
  }
}

module attributes {stable_mosaic.version = 11 : i64} {
  func.func @_conv_bn_relu_kernel(%arg0: i32, %arg1: memref<256x48xbf16, #tpu.memory_space<vmem>>, %arg2: memref<48x128xbf16, #tpu.memory_space<vmem>>, %arg3: memref<1x128xf32, #tpu.memory_space<vmem>>, %arg4: memref<1x128xf32, #tpu.memory_space<vmem>>, %arg5: memref<256x128xf32, #tpu.memory_space<vmem>>) attributes {dimension_semantics = [#tpu.dimension_semantics<parallel>], iteration_bounds = array<i64: 2>, scalar_prefetch = 0 : i64, scratch_operands = 0 : i64, tpu.core_type = #tpu.core_type<tc>, window_params = [{transform_indices = @transform_0, window_bounds = array<i64: 256, 48>}, {pipeline_mode = #tpu.pipeline_mode<synchronous>, transform_indices = @transform_1, window_bounds = array<i64: 48, 128>}, {pipeline_mode = #tpu.pipeline_mode<synchronous>, transform_indices = @transform_2, window_bounds = array<i64: 1, 128>}, {pipeline_mode = #tpu.pipeline_mode<synchronous>, transform_indices = @transform_3, window_bounds = array<i64: 1, 128>}, {transform_indices = @transform_4, window_bounds = array<i64: 256, 128>}]} {
    %c0 = arith.constant 0 : index
    %c0_0 = arith.constant 0 : index
    %0 = vector.load %arg1[%c0, %c0_0] : memref<256x48xbf16, #tpu.memory_space<vmem>>, vector<256x48xbf16>
    %c0_1 = arith.constant 0 : index
    %c0_2 = arith.constant 0 : index
    %1 = vector.load %arg2[%c0_1, %c0_2] : memref<48x128xbf16, #tpu.memory_space<vmem>>, vector<48x128xbf16>
    %cst = arith.constant dense<0.000000e+00> : vector<256x128xf32>
    %2 = tpu.matmul %0, %1, %cst {dimension_numbers = #tpu.dot_dimension_numbers<[1], [0], [0], [1], [0, 0, 1, 1], [], []>} : vector<256x48xbf16>, vector<48x128xbf16>, vector<256x128xf32> -> vector<256x128xf32>
    %c0_3 = arith.constant 0 : index
    %c0_4 = arith.constant 0 : index
    %3 = vector.load %arg3[%c0_3, %c0_4] : memref<1x128xf32, #tpu.memory_space<vmem>>, vector<1x128xf32>
    %4 = vector.broadcast %3 : vector<1x128xf32> to vector<256x128xf32>
    %5 = arith.mulf %2, %4 : vector<256x128xf32>
    %c0_5 = arith.constant 0 : index
    %c0_6 = arith.constant 0 : index
    %6 = vector.load %arg4[%c0_5, %c0_6] : memref<1x128xf32, #tpu.memory_space<vmem>>, vector<1x128xf32>
    %7 = vector.broadcast %6 : vector<1x128xf32> to vector<256x128xf32>
    %8 = arith.addf %5, %7 : vector<256x128xf32>
    %cst_7 = arith.constant 0.000000e+00 : f32
    %9 = vector.broadcast %cst_7 : f32 to vector<256x128xf32>
    %10 = arith.maximumf %8, %9 : vector<256x128xf32>
    %c0_8 = arith.constant 0 : index
    %c0_9 = arith.constant 0 : index
    %11 = vector.load %arg5[%c0_8, %c0_9] : memref<256x128xf32, #tpu.memory_space<vmem>>, vector<256x128xf32>
    tpu.vector_store %arg5[%c0_8, %c0_9], %10 {strides = array<i32>} : memref<256x128xf32, #tpu.memory_space<vmem>>, vector<256x128xf32>,
    return
  }
  func.func @transform_0(%arg0: i32) -> (i32, i32) {
    %c0_i32 = arith.constant 0 : i32
    %c0_i32_0 = arith.constant 0 : i32
    return %arg0, %c0_i32 : i32, i32
  }
  func.func @transform_1(%arg0: i32) -> (i32, i32) {
    %c0_i32 = arith.constant 0 : i32
    %c0_i32_0 = arith.constant 0 : i32
    %c0_i32_1 = arith.constant 0 : i32
    return %c0_i32, %c0_i32_0 : i32, i32
  }
  func.func @transform_2(%arg0: i32) -> (i32, i32) {
    %c0_i32 = arith.constant 0 : i32
    %c0_i32_0 = arith.constant 0 : i32
    %c0_i32_1 = arith.constant 0 : i32
    return %c0_i32, %c0_i32_0 : i32, i32
  }
  func.func @transform_3(%arg0: i32) -> (i32, i32) {
    %c0_i32 = arith.constant 0 : i32
    %c0_i32_0 = arith.constant 0 : i32
    %c0_i32_1 = arith.constant 0 : i32
    return %c0_i32, %c0_i32_0 : i32, i32
  }
  func.func @transform_4(%arg0: i32) -> (i32, i32) {
    %c0_i32 = arith.constant 0 : i32
    %c0_i32_0 = arith.constant 0 : i32
    return %arg0, %c0_i32 : i32, i32
  }
}

</mosaic_0001>

<bundles_post_ra>
// kernel: conv_bn_relu_2d.3
= control target key start
LH: loop header
LB: loop body
LE: loop exit
PB: predicated region body
PF: predicated region fallthrough
CT: control target
= control target key end

     0   :  { %s917_s15 = smov 0   ;;  %s1089_s0 = inlined_call_operand.vmem [shape: bf16[512,48], index: 0, kind: input, shape index: {}]   ;;  %s1090_s1 = inlined_call_operand.vmem [shape: bf16[48,128], index: 1, kind: input, shape index: {}]   ;;  %s1091_s2 = inlined_call_operand.vmem [shape: f32[1,128], index: 2, kind: input, shape index: {}]   ;;  %s1092_s3 = inlined_call_operand.vmem [shape: f32[1,128], index: 3, kind: input, shape index: {}]   ;;  %s1093_s4 = inlined_call_operand.vmem [shape: f32[512,128], index: 4, kind: output, shape index: {}]  }
   0x1 LB: > { %s746_s16 = sadd.s32 4294967295, %s890_s15   ;;  %p750_p0 = scmp.ge.s32.totalorder %s890_s15, 1  ;;  %s890_s15 = sphi %s917_s15, %s14_s15  }
   0x2   : > { %p163_p1 = scmp.lt.s32.totalorder %s890_s15, 3 }
   0x4   : > { %p164_p2 = pnand %p750_p0, %p163_p1 }
   0x5   : > { %s751_s19 = sshll.u32 (!%p164_p2), %s746_s16, 5 }
   0x6   : > { %167 = sbr.rel (%p164_p2) target bundleno = 254 (0xfe), region = 36  ;;  %p190_p3 = scmp.lt.s32.totalorder (!%p164_p2), %s751_s19, 63 }
   0xb   : > { %v865_v0 = vld [vmem:[%s1090_s1 + $0x10] sm:$0xff]   ;;  %v866_v1 = vld [vmem:[%s1090_s1 + $0x8] sm:$0xff]   ;;  %s1095_s19 = smov (!%p190_p3, %s751_s19), 63  ;;  %v867_v2 = vld [vmem:[%s1090_s1] sm:$0xff]   ;;  %vm338_vm0 = vcmask 392192  }
   0xc   : > { %813 = vmatprep.subr.bf16.mxu0 %v865_v0  ;;  %851 = vmatprep.subr.bf16.mxu1 %v865_v0  ;;  %s752_s24 = sshll.u32 %s1095_s19, 2  ;;  %v977_v19 = vld [vmem:[%s1091_s2] ss:$0 sm:$0xff]  ;;  %s754_s6 = sshll.u32 %s1095_s19, 3 }
   0xd   : > { %814 = vmatpush3.bf16.msra.mxu0 %v865_v0  ;;  %854 = vmatpush3.bf16.msra.mxu1 %v865_v0  ;;  %s940_s27 = scalar_lea.vmem %s1089_s0, %s752_s24  ;;  %v982_v21 = vld [vmem:[%s1092_s3] ss:$0 sm:$0xff]  ;;  %s994_s9 = scalar_lea.vmem %s1093_s4, %s754_s6 }
   0xe   : > { %815 = vmatprep.subr.bf16.mxu0 %v866_v1  ;;  %852 = vmatprep.subr.bf16.mxu1 %v866_v1  ;;  %v868_v3 = vld [vmem:[%s940_s27] sm:$0xff]   ;;  %v870_v5 = vld [vmem:[%s940_s27 + $0x8] sm:$0xff]   ;;  %v872_v7 = vld [vmem:[%s940_s27 + $0x10] sm:$0xff]  }
   0xf   : > { %v869_v4 = vld [vmem:[%s940_s27 + $0x40] sm:$0xff]   ;;  %819 = vmatprep.mubr.msk.bf16.mxu0 %vm338_vm0, %v868_v3  ;;  %v871_v6 = vld [vmem:[%s940_s27 + $0x48] sm:$0xff]   ;;  %v873_v8 = vld [vmem:[%s940_s27 + $0x50] sm:$0xff]  }
  0x10   : > { %835 = vmatprep.mubr.msk.bf16.mxu1 %vm338_vm0, %v869_v4  ;;  %v874_v9 = vld [vmem:[%s940_s27 + $0x18] sm:$0xff]   ;;  %v876_v11 = vld [vmem:[%s940_s27 + $0x20] sm:$0xff]   ;;  %v878_v13 = vld [vmem:[%s940_s27 + $0x28] sm:$0xff]  }
  0x11   : > { %816 = vmatpush3.bf16.msra.mxu0 %v866_v1  ;;  %855 = vmatpush3.bf16.msra.mxu1 %v866_v1  ;;  %v875_v10 = vld [vmem:[%s940_s27 + $0x58] sm:$0xff]   ;;  %v877_v12 = vld [vmem:[%s940_s27 + $0x60] sm:$0xff]   ;;  %v879_v14 = vld [vmem:[%s940_s27 + $0x68] sm:$0xff]  }
  0x12   : > { %817 = vmatprep.subr.bf16.mxu0 %v867_v2  ;;  %853 = vmatprep.subr.bf16.mxu1 %v867_v2  ;;  %v880_v15 = vld [vmem:[%s940_s27 + $0x30] sm:$0xff]   ;;  %v882_v17 = vld [vmem:[%s940_s27 + $0x38] sm:$0xff]  }
  0x13   : > { %v881_v16 = vld [vmem:[%s940_s27 + $0x70] sm:$0xff]   ;;  %v883_v18 = vld [vmem:[%s940_s27 + $0x78] sm:$0xff]  }
  0x15   : > { %818 = vmatpush3.bf16.msra.mxu0 %v867_v2  ;;  %856 = vmatpush3.bf16.msra.mxu1 %v867_v2 }
  0x18   : > { %820 = vmatmul.mubr.msk.bf16.vlgmr.msra.gmra.mxu0 %vm338_vm0, %v870_v5  ;;  %836 = vmatmul.mubr.msk.bf16.vlgmr.msra.gmra.mxu1 %vm338_vm0, %v871_v6 }
  0x19   : > { %823 = vmatprep.mubr.msk.bf16.mxu0 %vm338_vm0, %v872_v7  ;;  %839 = vmatprep.mubr.msk.bf16.mxu1 %vm338_vm0, %v873_v8 }
  0x20   : > { %824 = vmatmul.mubr.msk.bf16.gmra.mxu0 %vm338_vm0, %v874_v9  ;;  %840 = vmatmul.mubr.msk.bf16.gmra.mxu1 %vm338_vm0, %v875_v10 }
  0x21   : > { %827 = vmatprep.mubr.msk.bf16.mxu0 %vm338_vm0, %v876_v11  ;;  %843 = vmatprep.mubr.msk.bf16.mxu1 %vm338_vm0, %v877_v12 }
  0x28   : > { %828 = vmatmul.mubr.msk.bf16.gmra.mxu0 %vm338_vm0, %v878_v13  ;;  %844 = vmatmul.mubr.msk.bf16.gmra.mxu1 %vm338_vm0, %v879_v14 }
  0x29   : > { %831 = vmatprep.mubr.msk.bf16.mxu0 %vm338_vm0, %v880_v15  ;;  %847 = vmatprep.mubr.msk.bf16.mxu1 %vm338_vm0, %v881_v16 }
  0x30   : > { %832 = vmatmul.mubr.msk.bf16.gmra.mxu0 %vm338_vm0, %v882_v17  ;;  %848 = vmatmul.mubr.msk.bf16.gmra.mxu1 %vm338_vm0, %v883_v18 }
  0xd8   : > { %v821_v20 = vpop.f32.mrf.mxu0  ;;  %v837_v22 = vpop.f32.mrf.mxu1 }
  0xd9   : > { %v557_v23 = vmul.f32 %v821_v20, %v977_v19  ;;  %v573_v24 = vmul.f32 %v837_v22, %v977_v19 }
  0xda   : > { %v421_v25 = vpop.f32.mrf.mxu0  ;;  %v485_v26 = vpop.f32.mrf.mxu1 }
  0xdb   : > { %v596_v27 = vadd.f32 %v982_v21, %v557_v23  ;;  %v612_v28 = vadd.f32 %v982_v21, %v573_v24  ;;  %v555_v29 = vmul.f32 %v977_v19, %v421_v25  ;;  %v571_v30 = vmul.f32 %v977_v19, %v485_v26 }
  0xdc   : > { %v822_v31 = vpop.f32.mrf.mxu0  ;;  %v838_v32 = vpop.f32.mrf.mxu1 }
  0xdd   : > { %v628_v33 = vmax.f32 %v596_v27, 0.0  ;;  %v644_v34 = vmax.f32 %v612_v28, 0.0  ;;  %v594_v35 = vadd.f32 %v982_v21, %v555_v29  ;;  %v610_v36 = vadd.f32 %v982_v21, %v571_v30 }
  0xde   : > { %v558_v37 = vmul.f32 %v822_v31, %v977_v19  ;;  %v574_v38 = vmul.f32 %v838_v32, %v977_v19  ;;  %v424_v39 = vpop.f32.mrf.mxu0  ;;  %v488_v40 = vpop.f32.mrf.mxu1 }
  0xdf   : > { %660 = vst [vmem:[%s994_s9 + $0x10] sm:$0xff] %v628_v33  ;;  %676 = vst [vmem:[%s994_s9 + $0x90] sm:$0xff] %v644_v34  ;;  %v626_v41 = vmax.f32 %v594_v35, 0.0  ;;  %v642_v42 = vmax.f32 %v610_v36, 0.0  ;;  %v556_v43 = vmul.f32 %v977_v19, %v424_v39  ;;  %v572_v44 = vmul.f32 %v977_v19, %v488_v40 }
  0xe0   : > { %v597_v45 = vadd.f32 %v982_v21, %v558_v37  ;;  %v613_v46 = vadd.f32 %v982_v21, %v574_v38  ;;  %v825_v47 = vpop.f32.mrf.mxu0  ;;  %v841_v48 = vpop.f32.mrf.mxu1 }
  0xe1   : > { %658 = vst [vmem:[%s994_s9] sm:$0xff] %v626_v41  ;;  %674 = vst [vmem:[%s994_s9 + $0x80] sm:$0xff] %v642_v42  ;;  %v595_v49 = vadd.f32 %v982_v21, %v556_v43  ;;  %v611_v50 = vadd.f32 %v982_v21, %v572_v44  ;;  %v561_v51 = vmul.f32 %v825_v47, %v977_v19 }
  0xe2   : > { %v577_v52 = vmul.f32 %v841_v48, %v977_v19  ;;  %v629_v53 = vmax.f32 %v597_v45, 0.0  ;;  %v645_v54 = vmax.f32 %v613_v46, 0.0  ;;  %v437_v55 = vpop.f32.mrf.mxu0  ;;  %v501_v56 = vpop.f32.mrf.mxu1 }
  0xe3   : > { %v627_v57 = vmax.f32 %v595_v49, 0.0  ;;  %v643_v58 = vmax.f32 %v611_v50, 0.0  ;;  %v600_v59 = vadd.f32 %v982_v21, %v561_v51  ;;  %v559_v61 = vmul.f32 %v977_v19, %v437_v55 }
  0xe4   : > { %v616_v60 = vadd.f32 %v982_v21, %v577_v52  ;;  %661 = vst [vmem:[%s994_s9 + $0x18] sm:$0xff] %v629_v53  ;;  %677 = vst [vmem:[%s994_s9 + $0x98] sm:$0xff] %v645_v54  ;;  %v575_v62 = vmul.f32 %v977_v19, %v501_v56  ;;  %v826_v63 = vpop.f32.mrf.mxu0  ;;  %v842_v0 = vpop.f32.mrf.mxu1 }
  0xe5   : > { %659 = vst [vmem:[%s994_s9 + $0x8] sm:$0xff] %v627_v57  ;;  %675 = vst [vmem:[%s994_s9 + $0x88] sm:$0xff] %v643_v58  ;;  %v632_v1 = vmax.f32 %v600_v59, 0.0  ;;  %v562_v3 = vmul.f32 %v826_v63, %v977_v19  ;;  %v578_v4 = vmul.f32 %v842_v0, %v977_v19  ;;  %v598_v5 = vadd.f32 %v982_v21, %v559_v61 }
  0xe6   : > { %v648_v2 = vmax.f32 %v616_v60, 0.0  ;;  %v614_v6 = vadd.f32 %v982_v21, %v575_v62  ;;  %v440_v7 = vpop.f32.mrf.mxu0  ;;  %v504_v8 = vpop.f32.mrf.mxu1 }
  0xe7   : > { %664 = vst [vmem:[%s994_s9 + $0x30] sm:$0xff] %v632_v1  ;;  %v601_v9 = vadd.f32 %v982_v21, %v562_v3  ;;  %v617_v10 = vadd.f32 %v982_v21, %v578_v4  ;;  %v560_v11 = vmul.f32 %v977_v19, %v440_v7  ;;  %v576_v12 = vmul.f32 %v977_v19, %v504_v8 }
  0xe8   : > { %680 = vst [vmem:[%s994_s9 + $0xb0] sm:$0xff] %v648_v2  ;;  %v630_v13 = vmax.f32 %v598_v5, 0.0  ;;  %v646_v14 = vmax.f32 %v614_v6, 0.0  ;;  %v829_v15 = vpop.f32.mrf.mxu0  ;;  %v845_v16 = vpop.f32.mrf.mxu1 }
  0xe9   : > { %v633_v17 = vmax.f32 %v601_v9, 0.0  ;;  %v649_v18 = vmax.f32 %v617_v10, 0.0  ;;  %v599_v20 = vadd.f32 %v982_v21, %v560_v11  ;;  %v615_v22 = vadd.f32 %v982_v21, %v576_v12 }
  0xea   : > { %662 = vst [vmem:[%s994_s9 + $0x20] sm:$0xff] %v630_v13  ;;  %678 = vst [vmem:[%s994_s9 + $0xa0] sm:$0xff] %v646_v14  ;;  %v565_v23 = vmul.f32 %v829_v15, %v977_v19  ;;  %v581_v24 = vmul.f32 %v845_v16, %v977_v19  ;;  %v453_v25 = vpop.f32.mrf.mxu0  ;;  %v517_v26 = vpop.f32.mrf.mxu1 }
  0xeb   : > { %665 = vst [vmem:[%s994_s9 + $0x38] sm:$0xff] %v633_v17  ;;  %681 = vst [vmem:[%s994_s9 + $0xb8] sm:$0xff] %v649_v18  ;;  %v631_v27 = vmax.f32 %v599_v20, 0.0  ;;  %v647_v28 = vmax.f32 %v615_v22, 0.0  ;;  %v563_v29 = vmul.f32 %v977_v19, %v453_v25  ;;  %v579_v30 = vmul.f32 %v977_v19, %v517_v26 }
  0xec   : > { %v604_v31 = vadd.f32 %v982_v21, %v565_v23  ;;  %v620_v32 = vadd.f32 %v982_v21, %v581_v24  ;;  %v830_v33 = vpop.f32.mrf.mxu0  ;;  %v846_v34 = vpop.f32.mrf.mxu1 }
  0xed   : > { %663 = vst [vmem:[%s994_s9 + $0x28] sm:$0xff] %v631_v27  ;;  %679 = vst [vmem:[%s994_s9 + $0xa8] sm:$0xff] %v647_v28  ;;  %v602_v35 = vadd.f32 %v982_v21, %v563_v29  ;;  %v618_v36 = vadd.f32 %v982_v21, %v579_v30  ;;  %v566_v37 = vmul.f32 %v830_v33, %v977_v19 }
  0xee   : > { %v582_v38 = vmul.f32 %v846_v34, %v977_v19  ;;  %v636_v39 = vmax.f32 %v604_v31, 0.0  ;;  %v652_v40 = vmax.f32 %v620_v32, 0.0  ;;  %v456_v41 = vpop.f32.mrf.mxu0  ;;  %v520_v42 = vpop.f32.mrf.mxu1 }
  0xef   : > { %v634_v43 = vmax.f32 %v602_v35, 0.0  ;;  %v650_v44 = vmax.f32 %v618_v36, 0.0  ;;  %v605_v45 = vadd.f32 %v982_v21, %v566_v37  ;;  %v564_v47 = vmul.f32 %v977_v19, %v456_v41 }
  0xf0   : > { %v621_v46 = vadd.f32 %v982_v21, %v582_v38  ;;  %668 = vst [vmem:[%s994_s9 + $0x50] sm:$0xff] %v636_v39  ;;  %684 = vst [vmem:[%s994_s9 + $0xd0] sm:$0xff] %v652_v40  ;;  %v580_v48 = vmul.f32 %v977_v19, %v520_v42  ;;  %v833_v49 = vpop.f32.mrf.mxu0  ;;  %v849_v50 = vpop.f32.mrf.mxu1 }
  0xf1   : > { %666 = vst [vmem:[%s994_s9 + $0x40] sm:$0xff] %v634_v43  ;;  %682 = vst [vmem:[%s994_s9 + $0xc0] sm:$0xff] %v650_v44  ;;  %v637_v51 = vmax.f32 %v605_v45, 0.0  ;;  %v569_v53 = vmul.f32 %v833_v49, %v977_v19  ;;  %v585_v54 = vmul.f32 %v849_v50, %v977_v19  ;;  %v603_v55 = vadd.f32 %v982_v21, %v564_v47 }
  0xf2   : > { %v653_v52 = vmax.f32 %v621_v46, 0.0  ;;  %v619_v56 = vadd.f32 %v982_v21, %v580_v48  ;;  %v469_v57 = vpop.f32.mrf.mxu0  ;;  %v533_v58 = vpop.f32.mrf.mxu1 }
  0xf3   : > { %669 = vst [vmem:[%s994_s9 + $0x58] sm:$0xff] %v637_v51  ;;  %v608_v59 = vadd.f32 %v982_v21, %v569_v53  ;;  %v624_v60 = vadd.f32 %v982_v21, %v585_v54  ;;  %v567_v61 = vmul.f32 %v977_v19, %v469_v57  ;;  %v583_v62 = vmul.f32 %v977_v19, %v533_v58 }
  0xf4   : > { %685 = vst [vmem:[%s994_s9 + $0xd8] sm:$0xff] %v653_v52  ;;  %v635_v63 = vmax.f32 %v603_v55, 0.0  ;;  %v651_v0 = vmax.f32 %v619_v56, 0.0  ;;  %v834_v1 = vpop.f32.mrf.mxu0  ;;  %v850_v2 = vpop.f32.mrf.mxu1 }
  0xf5   : > { %v640_v3 = vmax.f32 %v608_v59, 0.0  ;;  %v656_v4 = vmax.f32 %v624_v60, 0.0  ;;  %v606_v5 = vadd.f32 %v982_v21, %v567_v61  ;;  %v622_v6 = vadd.f32 %v982_v21, %v583_v62 }
  0xf6   : > { %667 = vst [vmem:[%s994_s9 + $0x48] sm:$0xff] %v635_v63  ;;  %683 = vst [vmem:[%s994_s9 + $0xc8] sm:$0xff] %v651_v0  ;;  %v570_v7 = vmul.f32 %v834_v1, %v977_v19  ;;  %v586_v8 = vmul.f32 %v850_v2, %v977_v19  ;;  %v472_v9 = vpop.f32.mrf.mxu0  ;;  %v536_v10 = vpop.f32.mrf.mxu1 }
  0xf7   : > { %672 = vst [vmem:[%s994_s9 + $0x70] sm:$0xff] %v640_v3  ;;  %688 = vst [vmem:[%s994_s9 + $0xf0] sm:$0xff] %v656_v4  ;;  %v638_v11 = vmax.f32 %v606_v5, 0.0  ;;  %v654_v12 = vmax.f32 %v622_v6, 0.0  ;;  %v568_v13 = vmul.f32 %v977_v19, %v472_v9  ;;  %v584_v14 = vmul.f32 %v977_v19, %v536_v10 }
  0xf8   : > { %v609_v15 = vadd.f32 %v982_v21, %v570_v7  ;;  %v625_v16 = vadd.f32 %v982_v21, %v586_v8 }
  0xf9   : > { %670 = vst [vmem:[%s994_s9 + $0x60] sm:$0xff] %v638_v11  ;;  %686 = vst [vmem:[%s994_s9 + $0xe0] sm:$0xff] %v654_v12  ;;  %v607_v17 = vadd.f32 %v982_v21, %v568_v13  ;;  %v623_v18 = vadd.f32 %v982_v21, %v584_v14 }
  0xfa   : > { %v641_v20 = vmax.f32 %v609_v15, 0.0  ;;  %v657_v22 = vmax.f32 %v625_v16, 0.0 }
  0xfb   : > { %v639_v23 = vmax.f32 %v607_v17, 0.0  ;;  %v655_v24 = vmax.f32 %v623_v18, 0.0 }
  0xfc   : > { %673 = vst [vmem:[%s994_s9 + $0x78] sm:$0xff] %v641_v20  ;;  %689 = vst [vmem:[%s994_s9 + $0xf8] sm:$0xff] %v657_v22 }
  0xfd   : > { %671 = vst [vmem:[%s994_s9 + $0x68] sm:$0xff] %v639_v23  ;;  %687 = vst [vmem:[%s994_s9 + $0xe8] sm:$0xff] %v655_v24 }
  0xfe PF: > { %s14_s15 = sadd.s32 1, %s890_s15  }
  0xff   : > { %p11_p4 = scmp.ge.s32.totalorder %s14_s15, 4  }
 0x101   :  { %13 = sbr.rel (!%p11_p4) target bundleno = 1 (0x1), region = 66 }

// kernel: conv_bn_relu_2d.2
= control target key start
LH: loop header
LB: loop body
LE: loop exit
PB: predicated region body
PF: predicated region fallthrough
CT: control target
= control target key end

     0   :  { %s811_s9 = smov 0   ;;  %s896_s0 = inlined_call_operand.vmem [shape: bf16[512,48], index: 0, kind: input, shape index: {}]   ;;  %s897_s1 = inlined_call_operand.vmem [shape: bf16[48,128], index: 1, kind: input, shape index: {}]   ;;  %s898_s2 = inlined_call_operand.vmem [shape: f32[2,2,128], index: 2, kind: output, shape index: {}]  }
   0x1 LB: > { %s817_s10 = sadd.s32 4294967295, %s794_s9   ;;  %p657_p0 = scmp.ge.s32.totalorder %s794_s9, 1  ;;  %s794_s9 = sphi %s811_s9, %s12_s9  }
   0x2   : > { %p113_p1 = scmp.lt.s32.totalorder %s794_s9, 3 }
   0x4   : > { %p114_p2 = pnand %p657_p0, %p113_p1 }
   0x5   : > { %s658_s13 = sshll.u32 (!%p114_p2), %s817_s10, 5  ;;  %p140_p4 = scmp.lt.s32.totalorder (!%p114_p2), %s817_s10, 1 }
   0x6   : > { %117 = sbr.rel (%p114_p2) target bundleno = 301 (0x12d), region = 28  ;;  %p135_p3 = scmp.lt.s32.totalorder (!%p114_p2), %s658_s13, 63 }
   0xb   : > { %v769_v0 = vld [vmem:[%s897_s1 + $0x10] sm:$0xff]   ;;  %v770_v1 = vld [vmem:[%s897_s1 + $0x8] sm:$0xff]   ;;  %s900_s13 = smov (!%p135_p3, %s658_s13), 63  ;;  %v771_v2 = vld [vmem:[%s897_s1] sm:$0xff]   ;;  %vm281_vm0 = vcmask 392192   ;;  %s902_s10 = smov (!%p140_p4, %s817_s10), 1 }
   0xc   : > { %717 = vmatprep.subr.bf16.mxu0 %v769_v0  ;;  %755 = vmatprep.subr.bf16.mxu1 %v769_v0  ;;  %s659_s18 = sshll.u32 %s900_s13, 2  ;;  %s660_s22 = sshll.u32 %s902_s10, 1  ;;  %vm597_vm1 = vcmask 1040384  }
   0xd   : > { %718 = vmatpush3.bf16.msra.mxu0 %v769_v0  ;;  %758 = vmatpush3.bf16.msra.mxu1 %v769_v0  ;;  %s834_s21 = scalar_lea.vmem %s896_s0, %s659_s18  ;;  %s143_s25 = scalar_lea.vmem %s898_s2, %s660_s22 }
   0xe   : > { %719 = vmatprep.subr.bf16.mxu0 %v770_v1  ;;  %756 = vmatprep.subr.bf16.mxu1 %v770_v1  ;;  %v772_v3 = vld [vmem:[%s834_s21] sm:$0xff]   ;;  %v773_v4 = vld [vmem:[%s834_s21 + $0x8] sm:$0xff]   ;;  %v774_v5 = vld [vmem:[%s834_s21 + $0x10] sm:$0xff]  }
   0xf   : > { %723 = vmatprep.mubr.msk.bf16.mxu0 %vm281_vm0, %v772_v3  ;;  %v780_v6 = vld [vmem:[%s834_s21 + $0x40] sm:$0xff]   ;;  %v781_v7 = vld [vmem:[%s834_s21 + $0x48] sm:$0xff]   ;;  %v782_v8 = vld [vmem:[%s834_s21 + $0x50] sm:$0xff]  }
  0x10   : > { %739 = vmatprep.mubr.msk.bf16.mxu1 %vm281_vm0, %v780_v6  ;;  %v775_v9 = vld [vmem:[%s834_s21 + $0x18] sm:$0xff]   ;;  %v776_v10 = vld [vmem:[%s834_s21 + $0x20] sm:$0xff]   ;;  %v777_v13 = vld [vmem:[%s834_s21 + $0x28] sm:$0xff]  }
  0x11   : > { %720 = vmatpush3.bf16.msra.mxu0 %v770_v1  ;;  %759 = vmatpush3.bf16.msra.mxu1 %v770_v1  ;;  %v783_v11 = vld [vmem:[%s834_s21 + $0x58] sm:$0xff]   ;;  %v784_v12 = vld [vmem:[%s834_s21 + $0x60] sm:$0xff]   ;;  %v778_v14 = vld [vmem:[%s834_s21 + $0x30] sm:$0xff]  }
  0x12   : > { %721 = vmatprep.subr.bf16.mxu0 %v771_v2  ;;  %757 = vmatprep.subr.bf16.mxu1 %v771_v2  ;;  %v785_v15 = vld [vmem:[%s834_s21 + $0x68] sm:$0xff]   ;;  %v786_v16 = vld [vmem:[%s834_s21 + $0x70] sm:$0xff]   ;;  %v779_v17 = vld [vmem:[%s834_s21 + $0x38] sm:$0xff]  }
  0x13   : > { %v787_v18 = vld [vmem:[%s834_s21 + $0x78] sm:$0xff]  }
  0x15   : > { %722 = vmatpush3.bf16.msra.mxu0 %v771_v2  ;;  %760 = vmatpush3.bf16.msra.mxu1 %v771_v2 }
  0x18   : > { %724 = vmatmul.mubr.msk.bf16.vlgmr.msra.gmra.mxu0 %vm281_vm0, %v773_v4  ;;  %740 = vmatmul.mubr.msk.bf16.vlgmr.msra.gmra.mxu1 %vm281_vm0, %v781_v7 }
  0x19   : > { %727 = vmatprep.mubr.msk.bf16.mxu0 %vm281_vm0, %v774_v5  ;;  %743 = vmatprep.mubr.msk.bf16.mxu1 %vm281_vm0, %v782_v8 }
  0x20   : > { %728 = vmatmul.mubr.msk.bf16.gmra.mxu0 %vm281_vm0, %v775_v9  ;;  %744 = vmatmul.mubr.msk.bf16.gmra.mxu1 %vm281_vm0, %v783_v11 }
  0x21   : > { %731 = vmatprep.mubr.msk.bf16.mxu0 %vm281_vm0, %v776_v10  ;;  %747 = vmatprep.mubr.msk.bf16.mxu1 %vm281_vm0, %v784_v12 }
  0x28   : > { %732 = vmatmul.mubr.msk.bf16.gmra.mxu0 %vm281_vm0, %v777_v13  ;;  %748 = vmatmul.mubr.msk.bf16.gmra.mxu1 %vm281_vm0, %v785_v15 }
  0x29   : > { %735 = vmatprep.mubr.msk.bf16.mxu0 %vm281_vm0, %v778_v14  ;;  %751 = vmatprep.mubr.msk.bf16.mxu1 %vm281_vm0, %v786_v16 }
  0x30   : > { %736 = vmatmul.mubr.msk.bf16.gmra.mxu0 %vm281_vm0, %v779_v17  ;;  %752 = vmatmul.mubr.msk.bf16.gmra.mxu1 %vm281_vm0, %v787_v18 }
  0xd8   : > { %v725_v19 = vpop.f32.mrf.mxu0  ;;  %v868_v22 = vpop.f32.mrf.mxu1 }
  0xd9   : > { %v530_v30 = vmul.f32 %v725_v19, %v725_v19 }
  0xda   : > { %v364_v20 = vpop.f32.mrf.mxu0  ;;  %v870_v24 = vpop.f32.mrf.mxu1 }
  0xdb   : > { %v528_v25 = vmul.f32 %v364_v20, %v364_v20 }
  0xdc   : > { %v726_v21 = vpop.f32.mrf.mxu0  ;;  %v872_v29 = vpop.f32.mrf.mxu1 }
  0xdd   : > { %v531_v34 = vmul.f32 %v726_v21, %v726_v21 }
  0xde   : > { %v367_v23 = vpop.f32.mrf.mxu0  ;;  %v431_v38 = vpop.f32.mrf.mxu1 }
  0xdf   : > { %v491_v26 = vadd.f32 %v367_v23, %v364_v20  ;;  %v529_v27 = vmul.f32 %v367_v23, %v367_v23 }
  0xe0   : > { %v729_v28 = vpop.f32.mrf.mxu0  ;;  %v874_v47 = vpop.f32.mrf.mxu1 }
  0xe1   : > { %v492_v31 = vadd.f32 %v725_v19, %v491_v26  ;;  %v560_v32 = vadd.f32 %v529_v27, %v528_v25  ;;  %v534_v48 = vmul.f32 %v729_v28, %v729_v28 }
  0xe2   : > { %v380_v33 = vpop.f32.mrf.mxu0  ;;  %v444_v56 = vpop.f32.mrf.mxu1 }
  0xe3   : > { %v561_v35 = vadd.f32 %v560_v32, %v530_v30  ;;  %v493_v36 = vadd.f32 %v726_v21, %v492_v31  ;;  %v532_v40 = vmul.f32 %v380_v33, %v380_v33 }
  0xe4   : > { %v730_v37 = vpop.f32.mrf.mxu0  ;;  %v746_v1 = vpop.f32.mrf.mxu1 }
  0xe5   : > { %v494_v39 = vadd.f32 %v493_v36, %v380_v33  ;;  %v562_v41 = vadd.f32 %v561_v35, %v531_v34  ;;  %v535_v52 = vmul.f32 %v730_v37, %v730_v37  ;;  %v545_v33 = vmul.f32 %v431_v38, %v431_v38 }
  0xe6   : > { %v383_v42 = vpop.f32.mrf.mxu0  ;;  %v447_v10 = vpop.f32.mrf.mxu1  ;;  %v546_v36 = vmul.f32 %v868_v22, %v868_v22 }
  0xe7   : > { %v563_v43 = vadd.f32 %v562_v41, %v532_v40  ;;  %v495_v44 = vadd.f32 %v494_v39, %v383_v42  ;;  %v533_v45 = vmul.f32 %v383_v42, %v383_v42  ;;  %v547_v40 = vmul.f32 %v872_v29, %v872_v29 }
  0xe8   : > { %v733_v46 = vpop.f32.mrf.mxu0  ;;  %v749_v18 = vpop.f32.mrf.mxu1 }
  0xe9   : > { %v496_v49 = vadd.f32 %v729_v28, %v495_v44  ;;  %v564_v50 = vadd.f32 %v563_v43, %v533_v45  ;;  %v538_v2 = vmul.f32 %v733_v46, %v733_v46  ;;  %v544_v28 = vmul.f32 %v870_v24, %v870_v24 }
  0xea   : > { %v396_v51 = vpop.f32.mrf.mxu0  ;;  %v460_v27 = vpop.f32.mrf.mxu1  ;;  %v548_v45 = vmul.f32 %v444_v56, %v444_v56 }
  0xeb   : > { %v565_v53 = vadd.f32 %v564_v50, %v534_v48  ;;  %v497_v54 = vadd.f32 %v730_v37, %v496_v49  ;;  %v536_v58 = vmul.f32 %v396_v51, %v396_v51  ;;  %v549_v48 = vmul.f32 %v447_v10, %v447_v10 }
  0xec   : > { %v734_v55 = vpop.f32.mrf.mxu0  ;;  %v750_v35 = vpop.f32.mrf.mxu1  ;;  %v550_v50 = vmul.f32 %v874_v47, %v874_v47 }
  0xed   : > { %v498_v57 = vadd.f32 %v497_v54, %v396_v51  ;;  %v566_v59 = vadd.f32 %v565_v53, %v535_v52  ;;  %v539_v6 = vmul.f32 %v734_v55, %v734_v55  ;;  %v551_v52 = vmul.f32 %v746_v1, %v746_v1 }
  0xee   : > { %v399_v60 = vpop.f32.mrf.mxu0  ;;  %v463_v43 = vpop.f32.mrf.mxu1 }
  0xef   : > { %v567_v61 = vadd.f32 %v566_v59, %v536_v58  ;;  %v499_v62 = vadd.f32 %v498_v57, %v399_v60  ;;  %v537_v63 = vmul.f32 %v399_v60, %v399_v60  ;;  %v553_v60 = vmul.f32 %v463_v43, %v463_v43 }
  0xf0   : > { %v737_v0 = vpop.f32.mrf.mxu0  ;;  %v753_v49 = vpop.f32.mrf.mxu1 }
  0xf1   : > { %v500_v3 = vadd.f32 %v733_v46, %v499_v62  ;;  %v568_v4 = vadd.f32 %v567_v61, %v537_v63  ;;  %v542_v19 = vmul.f32 %v737_v0, %v737_v0  ;;  %v554_v62 = vmul.f32 %v749_v18, %v749_v18 }
  0xf2   : > { %v412_v5 = vpop.f32.mrf.mxu0 }
  0xf3   : > { %v569_v7 = vadd.f32 %v568_v4, %v538_v2  ;;  %v501_v8 = vadd.f32 %v734_v55, %v500_v3  ;;  %v540_v12 = vmul.f32 %v412_v5, %v412_v5  ;;  %v476_v55 = vpop.f32.mrf.mxu1  ;;  %v555_v2 = vmul.f32 %v750_v35, %v750_v35 }
  0xf4   : > { %v738_v9 = vpop.f32.mrf.mxu0 }
  0xf5   : > { %v502_v11 = vadd.f32 %v501_v8, %v412_v5  ;;  %v570_v13 = vadd.f32 %v569_v7, %v539_v6  ;;  %v543_v23 = vmul.f32 %v738_v9, %v738_v9  ;;  %v754_v61 = vpop.f32.mrf.mxu1  ;;  %v556_v6 = vmul.f32 %v476_v55, %v476_v55 }
  0xf6   : > { %v415_v14 = vpop.f32.mrf.mxu0 }
  0xf7   : > { %v571_v15 = vadd.f32 %v570_v13, %v540_v12  ;;  %v503_v16 = vadd.f32 %v502_v11, %v415_v14  ;;  %v541_v17 = vmul.f32 %v415_v14, %v415_v14  ;;  %v559_v13 = vmul.f32 %v754_v61, %v754_v61 }
  0xf9   : > { %v504_v20 = vadd.f32 %v737_v0, %v503_v16  ;;  %v572_v21 = vadd.f32 %v571_v15, %v541_v17 }
  0xfb   : > { %v505_v25 = vadd.f32 %v738_v9, %v504_v20  ;;  %v573_v26 = vadd.f32 %v572_v21, %v542_v19 }
  0xfd   : > { %v574_v30 = vadd.f32 %v573_v26, %v543_v23  ;;  %v506_v31 = vadd.f32 %v505_v25, %v870_v24 }
  0xff   : > { %v507_v32 = vadd.f32 %v506_v31, %v431_v38  ;;  %v575_v34 = vadd.f32 %v574_v30, %v544_v28 }
 0x101   : > { %v508_v37 = vadd.f32 %v868_v22, %v507_v32  ;;  %v576_v39 = vadd.f32 %v575_v34, %v545_v33 }
 0x103   : > { %v577_v41 = vadd.f32 %v576_v39, %v546_v36  ;;  %v509_v42 = vadd.f32 %v872_v29, %v508_v37  ;;  %v552_v29 = vmul.f32 %v460_v27, %v460_v27 }
 0x105   : > { %v510_v44 = vadd.f32 %v509_v42, %v444_v56  ;;  %v578_v24 = vadd.f32 %v577_v41, %v547_v40 }
 0x107   : > { %v579_v46 = vadd.f32 %v578_v24, %v548_v45  ;;  %v511_v38 = vadd.f32 %v510_v44, %v447_v10  ;;  %v558_v10 = vmul.f32 %v753_v49, %v753_v49 }
 0x109   : > { %v512_v22 = vadd.f32 %v874_v47, %v511_v38  ;;  %v580_v51 = vadd.f32 %v579_v46, %v549_v48  ;;  %v479_v47 = vpop.f32.mrf.mxu1 }
 0x10a   : > { %v557_v9 = vmul.f32 %v479_v47, %v479_v47 }
 0x10b   : > { %v581_v53 = vadd.f32 %v580_v51, %v550_v50  ;;  %v513_v54 = vadd.f32 %v746_v1, %v512_v22 }
 0x10d   : > { %v514_v57 = vadd.f32 %v513_v54, %v460_v27  ;;  %v582_v58 = vadd.f32 %v581_v53, %v551_v52 }
 0x10f   : > { %v583_v59 = vadd.f32 %v582_v58, %v552_v29  ;;  %v515_v56 = vadd.f32 %v514_v57, %v463_v43 }
 0x111   : > { %v516_v63 = vadd.f32 %v749_v18, %v515_v56  ;;  %v584_v0 = vadd.f32 %v583_v59, %v553_v60 }
 0x113   : > { %v585_v3 = vadd.f32 %v584_v0, %v554_v62  ;;  %v517_v4 = vadd.f32 %v750_v35, %v516_v63 }
 0x115   : > { %v518_v5 = vadd.f32 %v517_v4, %v476_v55  ;;  %v586_v7 = vadd.f32 %v585_v3, %v555_v2 }
 0x117   : > { %v587_v1 = vadd.f32 %v586_v7, %v556_v6  ;;  %v519_v8 = vadd.f32 %v518_v5, %v479_v47 }
 0x119   : > { %v520_v11 = vadd.f32 %v753_v49, %v519_v8  ;;  %v588_v12 = vadd.f32 %v587_v1, %v557_v9 }
 0x11b   : > { %v521_v14 = vadd.f32 %v754_v61, %v520_v11  ;;  %v589_v15 = vadd.f32 %v588_v12, %v558_v10 }
 0x11d   : > { %v522_v16 = vrot.slane %v521_v14, 4  ;;  %v590_v17 = vadd.f32 %v589_v15, %v559_v13 }
 0x11f   : > { %v523_v18 = vadd.f32 %v522_v16, %v521_v14  ;;  %v591_v19 = vrot.slane %v590_v17, 4 }
 0x121   : > { %v524_v20 = vrot.slane %v523_v18, 2  ;;  %v592_v21 = vadd.f32 %v591_v19, %v590_v17 }
 0x123   : > { %v525_v23 = vadd.f32 %v524_v20, %v523_v18  ;;  %v593_v25 = vrot.slane %v592_v21, 2 }
 0x125   : > { %v526_v26 = vrot.slane %v525_v23, 1  ;;  %v594_v27 = vadd.f32 %v593_v25, %v592_v21 }
 0x127   : > { %v595_v28 = vrot.slane %v594_v27, 1  ;;  %v527_v30 = vadd.f32 %v526_v26, %v525_v23 }
 0x129   : > { %v596_v31 = vadd.f32 %v595_v28, %v594_v27 }
 0x12b   : > { %v598_v32 = vsel %vm597_vm1, %v527_v30, %v596_v31 }
 0x12c   : > { %599 = vst [vmem:[%s143_s25] sm:$0x3] %v598_v32 }
 0x12d PF: > { %s12_s9 = sadd.s32 1, %s794_s9  }
 0x12e   : > { %p9_p5 = scmp.ge.s32.totalorder %s12_s9, 4  }
 0x130   :  { %11 = sbr.rel (!%p9_p5) target bundleno = 1 (0x1), region = 58 }

</bundles_post_ra>
